<compile_context>
chip_gen: v5e
topology: v5e:2x2
jax: 0.10.0
libtpu: 0.0.40
codegen_flags: <defaults>
</compile_context>

<pallas_src>
import functools

import jax
import jax.numpy as jnp
from jax.experimental import pallas as pl
from jax.experimental.pallas import tpu as pltpu


_LANE = 128               # lane width; 128-multiple output last dim => unmasked vst
_FULL_TILE_MAX = 2048     # use the full extent as the tile side if <= this
_TILE_CAP = 1024          # otherwise cap tile side here (4 KiB f32 DMA rows)
_SMALL_TILE = 1 << 20     # tiles <= 1 MiB get a 3-deep pipeline
_PACKED_BLOCK_CAP = 2 << 20  # per-step block cap on the batch-packed path


# ---------------------------------------------------------------------------
# Helpers
# ---------------------------------------------------------------------------

def _vmem_budget_bytes():
    """Generation-aware cap on the (double/triple-buffered) in+out working set."""
    try:
        cap = getattr(pltpu.get_tpu_info(), "vmem_capacity_bytes", None)
    except Exception:
        cap = None
    if cap is not None and cap >= (100 << 20):   # v5e / v6e: 128 MiB physical VMEM
        return 32 << 20
    return 20 << 20                              # v7x (64 MiB) or unknown: conservative


def _largest_aligned_divisor(extent, cap):
    """Largest multiple of 128 that divides `extent` and is <= cap (>= 128)."""
    t = min(cap, extent)
    t -= t % _LANE
    while t > _LANE and extent % t:
        t -= _LANE
    return max(t, _LANE)


def _spec(shape, index_map, multibuffer):
    """BlockSpec, optionally with 3-deep pipelining (pure DMA-bound kernel)."""
    if multibuffer:
        try:
            return pl.BlockSpec(shape, index_map, pipeline_mode=pl.Buffered(3))
        except (AttributeError, TypeError):
            pass
    return pl.BlockSpec(shape, index_map)


# ---------------------------------------------------------------------------
# Kernels
# ---------------------------------------------------------------------------

def _swapaxes_kernel(x_ref, o_ref):
    # (TB, C, S) block -> (TB, S, C) block: XLU transpose of the trailing plane.
    o_ref[...] = jnp.swapaxes(x_ref[...], 1, 2)


def _swapaxes_flat_kernel(C, S, x_ref, o_ref):
    # Lane-dense variant: input block (TB, 1, C*S), output block (TB, 1, S*C).
    # Both HBM DMAs move long contiguous runs; stores are full unmasked vst.
    tb = x_ref.shape[0]
    x = x_ref[...].reshape(tb, C, S)
    o_ref[...] = jnp.swapaxes(x, 1, 2).reshape(tb, 1, S * C)


# ---------------------------------------------------------------------------
# Pallas paths
# ---------------------------------------------------------------------------

def _transpose_tiled(x3, budget):
    """(B, C, S) -> (B, S, C); requires C % 128 == 0 and S % 128 == 0."""
    B, C, S = x3.shape
    item = jnp.dtype(x3.dtype).itemsize

    TC = _largest_aligned_divisor(C, C if C <= _FULL_TILE_MAX else _TILE_CAP)
    TS = _largest_aligned_divisor(S, S if S <= _FULL_TILE_MAX else _TILE_CAP)
    # Shrink until the double-buffered in+out working set fits the budget.
    while 4 * TC * TS * item > budget and (TC > _LANE or TS > _LANE):
        if TC >= TS and TC > _LANE:
            TC = _largest_aligned_divisor(C, TC - _LANE)
        else:
            TS = _largest_aligned_divisor(S, TS - _LANE)
    # Guarantee >= 2 grid steps so both v7x TensorCores get work.
    if B * (C // TC) * (S // TS) < 2:
        if S >= 2 * _LANE:
            TS = _largest_aligned_divisor(S, S // 2)
        elif C >= 2 * _LANE:
            TC = _largest_aligned_divisor(C, C // 2)

    tile_bytes = TC * TS * item
    multibuffer = tile_bytes <= _SMALL_TILE
    n_each = 3 if multibuffer else 2
    vmem_limit = int(max(16 << 20, 2 * n_each * tile_bytes + (4 << 20)))

    def run(mb):
        return pl.pallas_call(
            _swapaxes_kernel,
            out_shape=jax.ShapeDtypeStruct((B, S, C), x3.dtype),
            grid_spec=pl.GridSpec(
                # C-tile axis innermost: consecutive grid steps write consecutive
                # HBM addresses (write path is the scarcer resource on v5e).
                grid=(B, S // TS, C // TC),
                in_specs=[_spec((1, TC, TS), lambda b, si, ci: (b, ci, si), mb)],
                out_specs=_spec((1, TS, TC), lambda b, si, ci: (b, si, ci), mb),
            ),
            compiler_params=pltpu.CompilerParams(
                dimension_semantics=("parallel", "parallel", "parallel"),
                vmem_limit_bytes=vmem_limit,
            ),
        )(x3)

    if multibuffer:
        try:
            return run(True)
        except Exception:
            pass   # pipeline_mode unsupported by this lowering; use default depth
    return run(False)


def _transpose_c_aligned(x3, budget):
    """(B, C, S) -> (B, S, C) when C % 128 == 0 but S is unaligned.

    Tiles only the aligned C axis and takes the full S extent, so the output
    block's last dim (TC) stays a multiple of 128 -> unmasked vst stores.
    Returns None if even a 128-wide tile overflows the VMEM budget.
    """
    B, C, S = x3.shape
    item = jnp.dtype(x3.dtype).itemsize

    TC = _largest_aligned_divisor(C, C if C <= _FULL_TILE_MAX else _TILE_CAP)
    while 4 * TC * S * item > budget and TC > _LANE:
        TC = _largest_aligned_divisor(C, TC - _LANE)
    if 4 * TC * S * item > budget:
        return None
    if B * (C // TC) < 2 and C >= 2 * _LANE:     # >= 2 grid steps for v7x megacore
        TC = _largest_aligned_divisor(C, C // 2)

    vmem_limit = int(max(16 << 20, 4 * TC * S * item + (4 << 20)))
    return pl.pallas_call(
        _swapaxes_kernel,
        out_shape=jax.ShapeDtypeStruct((B, S, C), x3.dtype),
        grid_spec=pl.GridSpec(
            grid=(B, C // TC),
            in_specs=[pl.BlockSpec((1, TC, S), lambda b, ci: (b, ci, 0))],
            out_specs=pl.BlockSpec((1, S, TC), lambda b, ci: (b, 0, ci)),
        ),
        compiler_params=pltpu.CompilerParams(
            dimension_semantics=("parallel", "parallel"),
            vmem_limit_bytes=vmem_limit,
        ),
    )(x3)


def _pick_batch_tile(B, plane_bytes, budget):
    """Largest divisor TB of B fitting the budget, keeping >=2 grid steps and
    a moderate (~2 MiB) per-step block."""
    best = None
    for tb in range(1, B + 1):
        if B % tb:
            continue
        if 4 * tb * plane_bytes > budget:
            continue
        if B >= 2 and B // tb < 2:                  # keep both v7x TCs busy
            continue
        if tb > 1 and tb * plane_bytes > _PACKED_BLOCK_CAP:
            continue                                # bound vreg live ranges per step
        best = tb
    return best


def _transpose_batch_packed(x3, budget):
    """(B, C, S) -> (B, S, C) for unaligned planes, lane-dense formulation.

    Pallas sees the input as (B, 1, C*S) and the output as (B, 1, S*C) slabs,
    so both DMAs are long contiguous runs and stores are unmasked (biggest
    lever from the perf review, especially on v5e's single vst slot).
    Returns None if even a single plane overflows the VMEM budget.
    """
    B, C, S = x3.shape
    item = jnp.dtype(x3.dtype).itemsize
    plane_bytes = C * S * item
    TB = _pick_batch_tile(B, plane_bytes, budget)
    if TB is None:
        return None
    vmem_limit = int(max(16 << 20, 4 * TB * plane_bytes + (4 << 20)))
    params = pltpu.CompilerParams(
        dimension_semantics=("parallel",), vmem_limit_bytes=vmem_limit)

    try:
        out_flat = pl.pallas_call(
            functools.partial(_swapaxes_flat_kernel, C, S),
            out_shape=jax.ShapeDtypeStruct((B, 1, S * C), x3.dtype),
            grid_spec=pl.GridSpec(
                grid=(B // TB,),
                in_specs=[pl.BlockSpec((TB, 1, C * S), lambda b: (b, 0, 0))],
                out_specs=pl.BlockSpec((TB, 1, S * C), lambda b: (b, 0, 0)),
            ),
            compiler_params=params,
        )(x3.reshape(B, 1, C * S))
        return out_flat.reshape(B, S, C)
    except Exception:
        # Mosaic could not lower the in-kernel relayout for this (C, S); fall
        # back to the plain (masked-store) block layout — still bit-exact.
        return pl.pallas_call(
            _swapaxes_kernel,
            out_shape=jax.ShapeDtypeStruct((B, S, C), x3.dtype),
            grid_spec=pl.GridSpec(
                grid=(B // TB,),
                in_specs=[pl.BlockSpec((TB, C, S), lambda b: (b, 0, 0))],
                out_specs=pl.BlockSpec((TB, S, C), lambda b: (b, 0, 0)),
            ),
            compiler_params=params,
        )(x3)


# ---------------------------------------------------------------------------
# Public wrapper
# ---------------------------------------------------------------------------

def pallas_transpose(x, dim0, dim1, contiguous=False):
    """Equivalent of Transpose(dim0, dim1)(x). `contiguous` is a no-op in JAX."""
    del contiguous
    ndim = x.ndim
    d0, d1 = sorted((dim0 % ndim, dim1 % ndim))
    if d0 == d1:
        return x
    # Pallas path only for a trailing-two-axes swap; other permutations are
    # pure layout moves best left to XLA.
    if ndim < 2 or not (d0 == ndim - 2 and d1 == ndim - 1):
        return jnp.swapaxes(x, d0, d1)

    lead = x.shape[:-2]
    C, S = x.shape[-2], x.shape[-1]
    B = 1
    for d in lead:
        B *= d
    if B == 0 or C == 0 or S == 0:
        return jnp.swapaxes(x, d0, d1)

    budget = _vmem_budget_bytes()
    x3 = x.reshape(B, C, S)

    out3 = None
    if C % _LANE == 0 and S % _LANE == 0:
        out3 = _transpose_tiled(x3, budget)
    elif C % _LANE == 0:
        out3 = _transpose_c_aligned(x3, budget)
    if out3 is None:
        out3 = _transpose_batch_packed(x3, budget)
    if out3 is None:
        # Huge, non-128-aligned plane: would need masked edge tiles.
        # TODO(synk): add a masked-edge tiled path for huge unaligned planes.
        return jnp.swapaxes(x, d0, d1)
    return out3.reshape(*lead, S, C)


class TransposePallas:
    """Mirror of the PyTorch Transpose module (no parameters)."""

    def __init__(self, *dims, contiguous=False):
        self.dims, self.contiguous = dims, contiguous

    def __call__(self, x):
        return pallas_transpose(x, *self.dims, contiguous=self.contiguous)

    def __repr__(self):
        if self.contiguous:
            return (f"TransposePallas(dims="
                    f"{', '.join(str(d) for d in self.dims)}).contiguous()")
        return f"TransposePallas({', '.join(str(d) for d in self.dims)})"


if __name__ == "__main__":
    key = jax.random.PRNGKey(0)
    k1, k2, k3, k4 = jax.random.split(key, 4)

    # 1) Small tsai-style input (B, C, S): unaligned -> batch-packed lane-dense path.
    x_small = jax.random.normal(k1, (2, 8, 32), dtype=jnp.float32)
    out_small = jax.block_until_ready(TransposePallas(1, 2, contiguous=True)(x_small))
    assert out_small.shape == (2, 32, 8), out_small.shape
    assert out_small.dtype == x_small.dtype
    assert jnp.array_equal(out_small, jnp.swapaxes(x_small, 1, 2)), "packed mismatch"

    # 2) Fully 128-aligned input -> lane-dense tiled path.
    x_big = jax.random.normal(k2, (2, 128, 256), dtype=jnp.float32)
    out_big = jax.block_until_ready(TransposePallas(1, 2)(x_big))
    assert out_big.shape == (2, 256, 128), out_big.shape
    assert jnp.array_equal(out_big, jnp.swapaxes(x_big, 1, 2)), "tiled mismatch"

    # 3) Half-aligned input (C aligned, S not) -> half-aligned path.
    x_half = jax.random.normal(k3, (2, 128, 48), dtype=jnp.float32)
    out_half = jax.block_until_ready(TransposePallas(-2, -1)(x_half))
    assert out_half.shape == (2, 48, 128), out_half.shape
    assert jnp.array_equal(out_half, jnp.swapaxes(x_half, 1, 2)), "half-aligned mismatch"

    # 4) 4D input, trailing swap -> leading dims collapse into the batch axis.
    x_4d = jax.random.normal(k4, (2, 3, 8, 32), dtype=jnp.float32)
    out_4d = jax.block_until_ready(TransposePallas(2, 3)(x_4d))
    assert out_4d.shape == (2, 3, 32, 8), out_4d.shape
    assert jnp.array_equal(out_4d, jnp.swapaxes(x_4d, 2, 3)), "4d mismatch"

    # 5) Non-trailing swap -> jnp.swapaxes fallback (layout move left to XLA).
    out_nt = jax.block_until_ready(TransposePallas(0, 2)(x_small))
    assert jnp.array_equal(out_nt, jnp.swapaxes(x_small, 0, 2)), "fallback mismatch"

    print("KERNEL_OK")
</pallas_src>

<mosaic_0001>
module attributes {stable_mosaic.version = 11 : i64} {
  func.func @_swapaxes_flat_kernel(%arg0: i32, %arg1: memref<1x1x256xf32, #tpu.memory_space<vmem>>, %arg2: memref<1x1x256xf32, #tpu.memory_space<vmem>>) attributes {dimension_semantics = [#tpu.dimension_semantics<parallel>], iteration_bounds = array<i64: 2>, scalar_prefetch = 0 : i64, scratch_operands = 0 : i64, tpu.core_type = #tpu.core_type<tc>, window_params = [{transform_indices = @transform_0, window_bounds = array<i64: 1, 1, 256>}, {transform_indices = @transform_1, window_bounds = array<i64: 1, 1, 256>}]} {
    %c0 = arith.constant 0 : index
    %c0_0 = arith.constant 0 : index
    %c0_1 = arith.constant 0 : index
    %0 = vector.load %arg1[%c0, %c0_0, %c0_1] : memref<1x1x256xf32, #tpu.memory_space<vmem>>, vector<1x1x256xf32>
    %1 = vector.shape_cast %0 : vector<1x1x256xf32> to vector<1x8x32xf32>
    %2 = tpu.transpose %1, [0, 2, 1] : vector<1x8x32xf32> -> vector<1x32x8xf32>
    %3 = vector.shape_cast %2 : vector<1x32x8xf32> to vector<1x1x256xf32>
    %c0_2 = arith.constant 0 : index
    %c0_3 = arith.constant 0 : index
    %c0_4 = arith.constant 0 : index
    %4 = vector.load %arg2[%c0_2, %c0_3, %c0_4] : memref<1x1x256xf32, #tpu.memory_space<vmem>>, vector<1x1x256xf32>
    tpu.vector_store %arg2[%c0_2, %c0_3, %c0_4], %3 {strides = array<i32>} : memref<1x1x256xf32, #tpu.memory_space<vmem>>, vector<1x1x256xf32>,
    return
  }
  func.func @transform_0(%arg0: i32) -> (i32, i32, i32) {
    %c0_i32 = arith.constant 0 : i32
    %c0_i32_0 = arith.constant 0 : i32
    %c0_i32_1 = arith.constant 0 : i32
    return %arg0, %c0_i32, %c0_i32_0 : i32, i32, i32
  }
  func.func @transform_1(%arg0: i32) -> (i32, i32, i32) {
    %c0_i32 = arith.constant 0 : i32
    %c0_i32_0 = arith.constant 0 : i32
    %c0_i32_1 = arith.constant 0 : i32
    return %arg0, %c0_i32, %c0_i32_0 : i32, i32, i32
  }
}

module attributes {stable_mosaic.version = 11 : i64} {
  func.func @_swapaxes_kernel(%arg0: i32, %arg1: memref<1x8x32xf32, #tpu.memory_space<vmem>>, %arg2: memref<1x32x8xf32, #tpu.memory_space<vmem>>) attributes {dimension_semantics = [#tpu.dimension_semantics<parallel>], iteration_bounds = array<i64: 2>, scalar_prefetch = 0 : i64, scratch_operands = 0 : i64, tpu.core_type = #tpu.core_type<tc>, window_params = [{transform_indices = @transform_0, window_bounds = array<i64: 1, 8, 32>}, {transform_indices = @transform_1, window_bounds = array<i64: 1, 32, 8>}]} {
    %c0 = arith.constant 0 : index
    %c0_0 = arith.constant 0 : index
    %c0_1 = arith.constant 0 : index
    %0 = vector.load %arg1[%c0, %c0_0, %c0_1] : memref<1x8x32xf32, #tpu.memory_space<vmem>>, vector<1x8x32xf32>
    %1 = tpu.transpose %0, [0, 2, 1] : vector<1x8x32xf32> -> vector<1x32x8xf32>
    %c0_2 = arith.constant 0 : index
    %c0_3 = arith.constant 0 : index
    %c0_4 = arith.constant 0 : index
    %2 = vector.load %arg2[%c0_2, %c0_3, %c0_4] : memref<1x32x8xf32, #tpu.memory_space<vmem>>, vector<1x32x8xf32>
    tpu.vector_store %arg2[%c0_2, %c0_3, %c0_4], %1 {strides = array<i32>} : memref<1x32x8xf32, #tpu.memory_space<vmem>>, vector<1x32x8xf32>,
    return
  }
  func.func @transform_0(%arg0: i32) -> (i32, i32, i32) {
    %c0_i32 = arith.constant 0 : i32
    %c0_i32_0 = arith.constant 0 : i32
    %c0_i32_1 = arith.constant 0 : i32
    return %arg0, %c0_i32, %c0_i32_0 : i32, i32, i32
  }
  func.func @transform_1(%arg0: i32) -> (i32, i32, i32) {
    %c0_i32 = arith.constant 0 : i32
    %c0_i32_0 = arith.constant 0 : i32
    %c0_i32_1 = arith.constant 0 : i32
    return %arg0, %c0_i32, %c0_i32_0 : i32, i32, i32
  }
}

</mosaic_0001>

<bundles_post_ra>
// kernel: tpu_custom_call.1
= control target key start
LH: loop header
LB: loop body
LE: loop exit
PB: predicated region body
PF: predicated region fallthrough
CT: control target
= control target key end

     0   :  { %6 = vsyncpa [#allocation3], 0  ;;  %s1068_s0 = inlined_call_operand.hbm [shape: f32[2,1,256], index: 0, kind: input, shape index: {}]   ;;  %s1069_s1 = inlined_call_operand.hbm [shape: f32[2,1,256], index: 1, kind: output, shape index: {}]  }
   0x1   :  { %8 = vsyncpa [#allocation3 + $0x1], 0 }
   0x2   :  { %9 = vsyncpa [#allocation4], 0 }
   0x3   :  { %11 = vsyncpa [#allocation4 + $0x1], 0  ;;  %s811_s6 = smov 0   ;;  %s813_s7 = smov 0  }
   0x4   :  { %s815_s8 = smov 0   ;;  %s817_s9 = smov 0  }
   0x5 LB: > { %s832_s10 = sadd.s32 4294967295, %s782_s9   ;;  %s610_s11 = sadd.s32 4294967294, %s782_s9   ;;  %s782_s9 = sphi %s817_s9, %s1079_s9   ;;  %s778_s8 = sphi %s815_s8, %s1078_s8   ;;  %s774_s7 = sphi %s813_s7, %s1077_s7   ;;  %s770_s6 = sphi %s811_s6, %s1076_s6  }
   0x6   : > { %s836_s12 = sadd.s32 1, %s782_s9   ;;  %s24_s13 = sadd.s32 1, %s778_s8 }
   0x7   : > { %s21_s14 = ssub.s32 %s782_s9, %s836_s12  ;;  %p31_p0 = scmp.ne.s32.totalorder %s778_s8, %s774_s7 }
   0x8   : > { %p22_p1 = scmp.eq.s32.totalorder %s21_s14, 0  ;;  %p32_p2 = scmp.eq.s32.totalorder %s782_s9, 0 }
   0x9   : > { %p37_p3 = scmp.ne.s32.totalorder %s774_s7, %s770_s6  ;;  %p38_p4 = scmp.eq.s32.totalorder %s832_s10, 0 }
   0xa   : > { %s848_s15 = scalar_select %p22_p1, %s778_s8, %s24_s13  }
   0xb   : > { %p850_p5 = por %p32_p2, %p31_p0  ;;  %p854_p6 = por %p38_p4, %p37_p3 }
   0xc   : > { %p61_p7 = scmp.eq.s32.totalorder %s832_s10, 1  ;;  %p67_p8 = scmp.eq.s32.totalorder %s610_s11, 1 }
   0xd   : > { %p634_p10 = scmp.lt.s32.totalorder %s782_s9, 2  ;;  %s87_s20 = sand.u32 1, %s778_s8  }
   0xe   : > { %p861_p11 = por %p61_p7, %p31_p0  ;;  %p865_p12 = por %p67_p8, %p37_p3 }
   0xf   : > { %s614_s21 = sshll.u32 %s782_s9, 1  ;;  %s613_s22 = sshll.u32 %s87_s20, 1 }
  0x10   : > { %s95_s25 = scalar_lea.hbm %s1068_s0, %s614_s21  ;;  %s91_s27 = scalar_lea.vmem [#allocation2], %s613_s22 }
  0x11   : > { %s97_s26 = sshll.u32 %s95_s25, 4  ;;  %s99_s28 = sshll.u32 %s91_s27, 4  ;;  %s98_s26 = int_to_ptr.hbm [resolvable:$true] %s97_s26  ;;  %s100_s28 = int_to_ptr.vmem [resolvable:$true] %s99_s28 }
  0x12   : > { %p876_p13 = pnand %p634_p10, %p850_p5  ;;  %p615_p0 = scmp.ge.s32.totalorder %s782_s9, 1 }
  0x13   : > { %p104_p1 = scmp.lt.s32.totalorder %s782_s9, 3  ;;  %s88_s30 = scalar_lea.sflag [#allocation3], %s87_s20 }
  0x14   : > { %s686_s2 = sshra.s32 %s98_s26, 4  ;;  %p690_p3 = pneg %p876_p13  ;;  %s687_s2 = int_to_ptr.hbm [resolvable:$true] %s686_s2 }
  0x15   : > { %s688_s3 = scalar_lea.hbm %s687_s2, 2  ;;  %s693_s11 = scalar_lea.hbm %s1068_s0, 4 }
  0x16   : > { %p689_p2 = scmp.ne.s32.totalorder %s687_s2, %s688_s3  ;;  %p694_p5 = scmp.lt.s32.totalorder %s687_s2, %s1068_s0 }
  0x17   : > { %p695_p8 = scmp.lt.s32.totalorder %s693_s11, %s688_s3 }
  0x18   : > { %p691_p4 = pnand %p690_p3, %p689_p2 }
  0x19   : > { %p696_p10 = por %p695_p8, %p694_p5 }
  0x1a   : > { %p692_p7 = pneg %p691_p4 }
  0x1c   : > { %p697_p9 = pnand %p696_p10, %p692_p7 }
  0x1e   : > { %700 = shalt.err (!%p697_p9)
}
  0x1f   : > { %629 = dma.hbm_to_vmem [thread:$0]  (!%p876_p13), %s98_s26, 32, %s100_s28, %s88_s30  }
  0x20   : > { %p105_p2 = pnand %p615_p0, %p104_p1 }
  0x21   : > { %s897_s16 = sand.u32 (!%p105_p2), 1, %s774_s7  }
  0x22   : > { %108 = sbr.rel (%p105_p2) target bundleno = 573 (0x23d), region = 24  ;;  %s616_s20 = sshll.u32 (!%p105_p2), %s897_s16, 1 }
  0x23   : > { %s111_s21 = scalar_lea.sflag (!%p105_p2), [#allocation3], %s897_s16  ;;  %s114_s22 = scalar_lea.vmem (!%p105_p2), [#allocation2], %s616_s20 }
  0x27   : > { %761 = dma.done.wait (%p854_p6), %s111_s21, 32  }
  0x28   : > { %763 = vsyncadd (%p854_p6), %s111_s21, 4294967264  ;;  %v134_v0 = vld [vmem:[%s114_s22] sm:$0x3]  ;;  %s784_s23 = smov 96   ;;  %s785_s24 = smov 32   ;;  %vm196_vm0 = vcmask 1047556  }
  0x29   : > { %137 = vrot.lane.b32.xlu0 %v134_v0, %s784_s23  ;;  %v136_v1 = vrot.slane %v134_v0, 1  ;;  %146 = vst [vmem:[#allocation1] ss:$9 sm:$0xff] %v134_v0  ;;  %143 = vrot.lane.b32.xlu1 %v134_v0, %s785_s24  ;;  %s786_s25 = smov 64   ;;  %v787_v9 = vmov 1983009808  }
  0x2a   : > { %v199_v10 = vunpack.c.l.s4 %v787_v9  ;;  %v788_v11 = vmov 1934713408   ;;  %s789_s17 = smov 8   ;;  %s790_s26 = smov 24   ;;  %vm468_vm1 = vcmask 64512   ;;  %vm470_vm2 = vcmask 130048  }
  0x2b   : > { %154 = vst [vmem:[#allocation1 + $0x4] ss:$9 sm:$0xff] %v136_v1  ;;  %v209_v12 = vunpack.c.l.s4 %v788_v11  ;;  %s791_s27 = smov 16   ;;  %s792_s28 = smov 40   ;;  %vm472_vm3 = vcmask 195584   ;;  %vm474_vm4 = vcmask 261120  }
  0x2c   : > { %v910_v13 = vunpack.c.0.s8 %v199_v10  ;;  %s793_s29 = smov 56   ;;  %s794_s30 = smov 48   ;;  %vm476_vm5 = vcmask 326656   ;;  %vm478_vm6 = vcmask 392192   ;;  %vm480_vm7 = vcmask 457728  }
  0x2d   : > { %v912_v14 = vunpack.c.0.s8 %v209_v12  ;;  %s795_s2 = smov 72   ;;  %s796_s3 = smov 88   ;;  %vm482_vm8 = vcmask 523264   ;;  %vm484_vm9 = vcmask 588800   ;;  %vm486_vm10 = vcmask 654336  }
  0x2e   : > { %s797_s4 = smov 80   ;;  %s798_s5 = smov 104   ;;  %vm488_vm11 = vcmask 719872   ;;  %vm490_vm12 = vcmask 785408   ;;  %vm492_vm13 = vcmask 850944   ;;  %vm496_vm14 = vcmask 982016  }
  0x2f   : > { %s799_s11 = smov 112   ;;  %s800_s13 = smov 120   ;;  %vm494_vm15 = vcmask 916480  }
  0x30   : > { %s619_s14 = sshll.u32 %s832_s10, 1  ;;  %s133_s10 = scalar_lea.vmem [#allocation5], %s616_s20 }
  0x31   : > { %140 = vrot.lane.b32.xlu0 %v134_v0, %s786_s25 }
  0x9b   : > { %v138_v2 = vpop.permute.xlu0 %137  ;;  %v144_v3 = vpop.permute.xlu1 %143 }
  0x9c   : > { %v139_v4 = vrot.slane %v138_v2, 1  ;;  %148 = vst [vmem:[#allocation1 + $0x1] ss:$9 sm:$0xff] %v138_v2  ;;  %v145_v5 = vrot.slane %v144_v3, 1 }
  0x9d   : > { %152 = vst [vmem:[#allocation1 + $0x3] ss:$9 sm:$0xff] %v144_v3 }
  0x9e   : > { %156 = vst [vmem:[#allocation1 + $0x5] ss:$9 sm:$0xff] %v139_v4 }
  0x9f   : > { %160 = vst [vmem:[#allocation1 + $0x7] ss:$9 sm:$0xff] %v145_v5 }
  0xa3   : > { %v141_v6 = vpop.permute.xlu0 %140 }
  0xa4   : > { %v142_v7 = vrot.slane %v141_v6, 1  ;;  %150 = vst [vmem:[#allocation1 + $0x2] ss:$9 sm:$0xff] %v141_v6 }
  0xa6   : > { %158 = vst [vmem:[#allocation1 + $0x6] ss:$9 sm:$0xff] %v142_v7 }
  0xad   : > { %v161_v8 = vld [vmem:[#allocation1] sm:$0xff] }
  0xae   : > { %163 = vxpose.xlu1.b32.start.end [1/1] (short) (narrow) %v161_v8, 32 }
 0x152   : > { %v179_v15 = vpop.trf.xlu1 }
 0x153   : > { %v195_v16 = vrot.slane %v179_v15, 4  ;;  %v201_v17 = vperm.slane %v179_v15, %v910_v13 }
 0x155   : > { %v197_v18 = vsel %vm196_vm0, 0.0, %v195_v16  ;;  %v206_v19 = vrot.slane %v201_v17, 4  ;;  %v917_v20 = vperm.slane %v201_v17, %v912_v14 }
 0x156   : > { %v205_v23 = vperm.slane %v197_v18, %v910_v13 }
 0x157   : > { %v207_v21 = vsel %vm196_vm0, 0.0, %v206_v19  ;;  %v226_v22 = vrot.slane %v917_v20, 4 }
 0x158   : > { %v215_v24 = vperm.slane %v207_v21, %v912_v14  ;;  %v221_v30 = vperm.slane %v205_v23, %v912_v14  ;;  %v216_v31 = vrot.slane %v205_v23, 4 }
 0x159   : > { %v227_v25 = vsel %vm196_vm0, 0.0, %v226_v22 }
 0x15a   : > { %349 = vrot.lane.b32.xlu2 %v227_v25, %s789_s17  ;;  %v228_v26 = vrot.slane %v215_v24, 4  ;;  %v180_v27 = vpop.trf.xlu1  ;;  %v230_v34 = vrot.slane %v221_v30, 4  ;;  %v217_v36 = vsel %vm196_vm0, 0.0, %v216_v31 }
 0x15b   : > { %v234_v28 = vrot.slane %v180_v27, 4  ;;  %v225_v42 = vperm.slane %v217_v36, %v912_v14  ;;  %v239_v45 = vperm.slane %v180_v27, %v910_v13 }
 0x15c   : > { %v229_v29 = vsel %vm196_vm0, 0.0, %v228_v26  ;;  %v231_v41 = vsel %vm196_vm0, 0.0, %v230_v34 }
 0x15d   : > { %357 = vrot.lane.b32.xlu0 %v229_v29, %s790_s26  ;;  %v235_v32 = vsel %vm196_vm0, 0.0, %v234_v28  ;;  %v232_v48 = vrot.slane %v225_v42, 4  ;;  %v249_v50 = vperm.slane %v239_v45, %v912_v14  ;;  %v244_v52 = vrot.slane %v239_v45, 4 }
 0x15e   : > { %v930_v33 = vperm.slane %v235_v32, %v910_v13 }
 0x15f   : > { %v233_v51 = vsel %vm196_vm0, 0.0, %v232_v48  ;;  %v264_v53 = vrot.slane %v249_v50, 4  ;;  %v245_v54 = vsel %vm196_vm0, 0.0, %v244_v52 }
 0x160   : > { %v254_v35 = vrot.slane %v930_v33, 4  ;;  %v253_v56 = vperm.slane %v245_v54, %v912_v14 }
 0x161   : > { %v265_v55 = vsel %vm196_vm0, 0.0, %v264_v53 }
 0x162   : > { %353 = vrot.lane.b32.xlu2 %v215_v24, %s791_s27  ;;  %v181_v37 = vpop.trf.xlu1  ;;  %v255_v38 = vsel %vm196_vm0, 0.0, %v254_v35  ;;  %v266_v61 = vrot.slane %v253_v56, 4 }
 0x163   : > { %v272_v39 = vrot.slane %v181_v37, 4  ;;  %v937_v40 = vperm.slane %v255_v38, %v912_v14  ;;  %v277_v58 = vperm.slane %v181_v37, %v910_v13 }
 0x164   : > { %v267_v8 = vsel %vm196_vm0, 0.0, %v266_v61 }
 0x165   : > { %365 = vrot.lane.b32.xlu0 %v231_v41, %s792_s28  ;;  %v273_v43 = vsel %vm196_vm0, 0.0, %v272_v39  ;;  %v270_v44 = vrot.slane %v937_v40, 4  ;;  %v282_v2 = vrot.slane %v277_v58, 4  ;;  %v978_v19 = vperm.slane %v277_v58, %v912_v14 }
 0x166   : > { %v281_v46 = vperm.slane %v273_v43, %v910_v13 }
 0x167   : > { %v947_v47 = vsel %vm196_vm0, 0.0, %v270_v44  ;;  %v302_v24 = vrot.slane %v978_v19, 4 }
 0x168   : > { %v297_v49 = vperm.slane %v281_v46, %v912_v14  ;;  %v292_v23 = vrot.slane %v281_v46, 4 }
 0x169   : > { %v303_v26 = vsel %vm196_vm0, 0.0, %v302_v24 }
 0x16a   : > { %361 = vrot.lane.b32.xlu2 %v221_v30, %s785_s24  ;;  %421 = vrot.lane.b32.xlu1 %v297_v49, %s785_s24  ;;  %v182_v57 = vpop.trf.xlu1  ;;  %v306_v25 = vrot.slane %v297_v49, 4  ;;  %v293_v27 = vsel %vm196_vm0, 0.0, %v292_v23  ;;  %v259_v30 = vperm.slane %v930_v33, %v912_v14  ;;  %s537_s24 = sshll.u32 %s133_s10, 4  ;;  %s538_s24 = int_to_ptr.vmem [resolvable:$true] %s537_s24 }
 0x16b   : > { %v310_v59 = vrot.slane %v182_v57, 4  ;;  %v315_v60 = vperm.slane %v182_v57, %v910_v13  ;;  %v301_v29 = vperm.slane %v293_v27, %v912_v14 }
 0x16c   : > { %v307_v28 = vsel %vm196_vm0, 0.0, %v306_v25  ;;  %v268_v34 = vrot.slane %v259_v30, 4 }
 0x16d   : > { %373 = vrot.lane.b32.xlu0 %v233_v51, %s793_s29  ;;  %v311_v62 = vsel %vm196_vm0, 0.0, %v310_v59  ;;  %v320_v63 = vrot.slane %v315_v60, 4  ;;  %v325_v0 = vperm.slane %v315_v60, %v912_v14  ;;  %v308_v31 = vrot.slane %v301_v29, 4 }
 0x16e   : > { %v319_v1 = vperm.slane %v311_v62, %v910_v13  ;;  %v283_v13 = vsel %vm196_vm0, 0.0, %v282_v2  ;;  %v269_v35 = vsel %vm196_vm0, 0.0, %v268_v34 }
 0x16f   : > { %v321_v3 = vsel %vm196_vm0, 0.0, %v320_v63  ;;  %v340_v4 = vrot.slane %v325_v0, 4  ;;  %v291_v21 = vperm.slane %v283_v13, %v912_v14  ;;  %v309_v32 = vsel %vm196_vm0, 0.0, %v308_v31 }
 0x170   : > { %v330_v5 = vrot.slane %v319_v1, 4  ;;  %v329_v6 = vperm.slane %v321_v3, %v912_v14  ;;  %v335_v7 = vperm.slane %v319_v1, %v912_v14 }
 0x171   : > { %v341_v9 = vsel %vm196_vm0, 0.0, %v340_v4  ;;  %v304_v36 = vrot.slane %v291_v21, 4 }
 0x172   : > { %369 = vrot.lane.b32.xlu2 %v225_v42, %s794_s30  ;;  %v342_v10 = vrot.slane %v329_v6, 4  ;;  %v344_v11 = vrot.slane %v335_v7, 4  ;;  %v331_v12 = vsel %vm196_vm0, 0.0, %v330_v5 }
 0x173   : > { %v339_v15 = vperm.slane %v331_v12, %v912_v14  ;;  %v305_v37 = vsel %vm196_vm0, 0.0, %v304_v36 }
 0x174   : > { %v343_v16 = vsel %vm196_vm0, 0.0, %v342_v10  ;;  %v345_v17 = vsel %vm196_vm0, 0.0, %v344_v11 }
 0x175   : > { %381 = vrot.lane.b32.xlu0 %v265_v55, %s795_s2  ;;  %v346_v18 = vrot.slane %v339_v15, 4 }
 0x177   : > { %v347_v22 = vsel %vm196_vm0, 0.0, %v346_v18  ;;  %vm516_vm0 = vcmask 1040384  }
 0x17a   : > { %377 = vrot.lane.b32.xlu2 %v249_v50, %s786_s25 }
 0x17d   : > { %389 = vrot.lane.b32.xlu0 %v267_v8, %s796_s3 }
 0x182   : > { %385 = vrot.lane.b32.xlu2 %v253_v56, %s797_s4 }
 0x185   : > { %413 = vrot.lane.b32.xlu0 %v291_v21, %s791_s27 }
 0x18a   : > { %409 = vrot.lane.b32.xlu2 %v303_v26, %s789_s17  ;;  %v519_v26 = vlaneseq  ;;  %s525_s17 = scalar_lea.sflag [#allocation4], %s897_s16 }
 0x18d   : > { %425 = vrot.lane.b32.xlu0 %v307_v28, %s792_s28 }
 0x192   : > { %393 = vrot.lane.b32.xlu2 %v259_v30, %s784_s23 }
 0x195   : > { %433 = vrot.lane.b32.xlu0 %v309_v32, %s793_s29  ;;  %s736_s29 = scalar_lea.hbm %s1069_s1, 4 }
 0x19a   : > { %397 = vrot.lane.b32.xlu2 %v269_v35, %s798_s5 }
 0x19d   : > { %441 = vrot.lane.b32.xlu0 %v341_v9, %s795_s2 }
 0x1a2   : > { %417 = vrot.lane.b32.xlu2 %v305_v37, %s790_s26 }
 0x1a5   : > { %449 = vrot.lane.b32.xlu0 %v343_v16, %s796_s3 }
 0x1aa   : > { %429 = vrot.lane.b32.xlu2 %v301_v29, %s794_s30 }
 0x1ad   : > { %457 = vrot.lane.b32.xlu0 %v345_v17, %s798_s5 }
 0x1b2   : > { %437 = vrot.lane.b32.xlu2 %v325_v0, %s786_s25 }
 0x1b4   : > { %v350_v14 = vpop.permute.xlu2 %349 }
 0x1b5   : > { %461 = vrot.lane.b32.xlu0 %v339_v15, %s799_s11  ;;  %v469_v33 = vsel %vm468_vm1, %v917_v20, %v350_v14 }
 0x1ba   : > { %445 = vrot.lane.b32.xlu2 %v329_v6, %s797_s4 }
 0x1bc   : > { %v354_v38 = vpop.permute.xlu2 %353 }
 0x1bd   : > { %v471_v39 = vsel %vm470_vm2, %v469_v33, %v354_v38  ;;  %465 = vrot.lane.b32.xlu0 %v347_v22, %s800_s13 }
 0x1c2   : > { %453 = vrot.lane.b32.xlu2 %v335_v7, %s784_s23  ;;  %s535_s23 = scalar_lea.hbm %s1069_s1, %s619_s14 }
 0x1c3   : > { %s539_s25 = sshll.u32 %s535_s23, 4  ;;  %s540_s25 = int_to_ptr.hbm [resolvable:$true] %s539_s25 }
 0x1c4   : > { %v362_v41 = vpop.permute.xlu2 %361  ;;  %s730_s26 = sshra.s32 %s540_s25, 4  ;;  %s731_s26 = int_to_ptr.hbm [resolvable:$true] %s730_s26 }
 0x1c5   : > { %405 = vrot.lane.b32.xlu0 %v947_v47, %s800_s13  ;;  %s732_s27 = scalar_lea.hbm %s731_s26, 2  ;;  %p737_p0 = scmp.lt.s32.totalorder %s731_s26, %s1069_s1 }
 0x1c6   : > { %p733_p6 = scmp.ne.s32.totalorder %s731_s26, %s732_s27  ;;  %p738_p1 = scmp.lt.s32.totalorder %s736_s29, %s732_s27 }
 0x1c8   : > { %p734_p9 = pnand %p733_p6, %p861_p11  ;;  %p739_p3 = por %p738_p1, %p737_p0 }
 0x1ca   : > { %401 = vrot.lane.b32.xlu2 %v937_v40, %s799_s11  ;;  %p735_p13 = pneg %p734_p9 }
 0x1cc   : > { %v370_v42 = vpop.permute.xlu2 %369  ;;  %p740_p4 = pnand %p739_p3, %p735_p13 }
 0x1cf   : > { %v358_v43 = vpop.permute.xlu0 %357 }
 0x1d0   : > { %v473_v44 = vsel %vm472_vm3, %v471_v39, %v358_v43 }
 0x1d1   : > { %v475_v20 = vsel %vm474_vm4, %v473_v44, %v362_v41 }
 0x1d4   : > { %v378_v45 = vpop.permute.xlu2 %377 }
 0x1d7   : > { %v366_v46 = vpop.permute.xlu0 %365 }
 0x1d8   : > { %v477_v48 = vsel %vm476_vm5, %v475_v20, %v366_v46 }
 0x1d9   : > { %v479_v49 = vsel %vm478_vm6, %v477_v48, %v370_v42 }
 0x1dc   : > { %v386_v50 = vpop.permute.xlu2 %385  ;;  %v422_v9 = vpop.permute.xlu1 %421 }
 0x1df   : > { %v374_v40 = vpop.permute.xlu0 %373 }
 0x1e0   : > { %v481_v47 = vsel %vm480_vm7, %v479_v49, %v374_v40 }
 0x1e1   : > { %v483_v51 = vsel %vm482_vm8, %v481_v47, %v378_v45 }
 0x1e4   : > { %v410_v52 = vpop.permute.xlu2 %409 }
 0x1e5   : > { %v498_v6 = vsel %vm468_vm1, %v978_v19, %v410_v52  ;;  %vm521_vm1 = vcmp.lt.s32.totalorder %v519_v26, 256 }
 0x1e7   : > { %v382_v53 = vpop.permute.xlu0 %381 }
 0x1e8   : > { %v485_v54 = vsel %vm484_vm9, %v483_v51, %v382_v53 }
 0x1e9   : > { %v487_v55 = vsel %vm486_vm10, %v485_v54, %v386_v50 }
 0x1ec   : > { %v394_v56 = vpop.permute.xlu2 %393 }
 0x1ef   : > { %v390_v57 = vpop.permute.xlu0 %389 }
 0x1f0   : > { %v489_v58 = vsel %vm488_vm11, %v487_v55, %v390_v57 }
 0x1f1   : > { %v491_v29 = vsel %vm490_vm12, %v489_v58, %v394_v56 }
 0x1f4   : > { %v398_v60 = vpop.permute.xlu2 %397 }
 0x1f5   : > { %v493_v30 = vsel %vm492_vm13, %v491_v29, %v398_v60 }
 0x1f7   : > { %v414_v59 = vpop.permute.xlu0 %413 }
 0x1f8   : > { %v499_v7 = vsel %vm470_vm2, %v498_v6, %v414_v59 }
 0x1fc   : > { %v418_v62 = vpop.permute.xlu2 %417 }
 0x1fd   : > { %v500_v8 = vsel %vm472_vm3, %v499_v7, %v418_v62 }
 0x1fe   : > { %v501_v10 = vsel %vm474_vm4, %v500_v8, %v422_v9 }
 0x1ff   : > { %v426_v61 = vpop.permute.xlu0 %425 }
 0x200   : > { %v502_v12 = vsel %vm476_vm5, %v501_v10, %v426_v61 }
 0x204   : > { %v430_v0 = vpop.permute.xlu2 %429 }
 0x205   : > { %v503_v15 = vsel %vm478_vm6, %v502_v12, %v430_v0 }
 0x207   : > { %v434_v63 = vpop.permute.xlu0 %433 }
 0x208   : > { %v504_v16 = vsel %vm480_vm7, %v503_v15, %v434_v63 }
 0x20c   : > { %v438_v2 = vpop.permute.xlu2 %437 }
 0x20d   : > { %v505_v17 = vsel %vm482_vm8, %v504_v16, %v438_v2 }
 0x20f   : > { %v442_v1 = vpop.permute.xlu0 %441 }
 0x210   : > { %v506_v18 = vsel %vm484_vm9, %v505_v17, %v442_v1 }
 0x214   : > { %v446_v5 = vpop.permute.xlu2 %445 }
 0x215   : > { %v507_v19 = vsel %vm486_vm10, %v506_v18, %v446_v5 }
 0x217   : > { %v450_v3 = vpop.permute.xlu0 %449 }
 0x218   : > { %v508_v22 = vsel %vm488_vm11, %v507_v19, %v450_v3 }
 0x21c   : > { %v454_v13 = vpop.permute.xlu2 %453 }
 0x21d   : > { %v509_v23 = vsel %vm490_vm12, %v508_v22, %v454_v13 }
 0x21f   : > { %v458_v4 = vpop.permute.xlu0 %457 }
 0x220   : > { %v510_v24 = vsel %vm492_vm13, %v509_v23, %v458_v4 }
 0x224   : > { %v402_v27 = vpop.permute.xlu2 %401 }
 0x225   : > { %v495_v31 = vsel %vm494_vm15, %v493_v30, %v402_v27 }
 0x227   : > { %v462_v11 = vpop.permute.xlu0 %461 }
 0x228   : > { %v511_v25 = vsel %vm494_vm15, %v510_v24, %v462_v11 }
 0x22f   : > { %v466_v21 = vpop.permute.xlu0 %465 }
 0x230   : > { %v512_v28 = vsel %vm496_vm14, %v511_v25, %v466_v21 }
 0x231   : > { %v515_v32 = vrot.slane %v512_v28, 7 }
 0x237   : > { %v406_v34 = vpop.permute.xlu0 %405 }
 0x238   : > { %v497_v35 = vsel %vm496_vm14, %v495_v31, %v406_v34 }
 0x239   : > { %v517_v36 = vsel %vm516_vm0, %v497_v35, %v515_v32 }
 0x23a   : > { %523 = vst.msk [vmem:[%s133_s10] sm:$0x3] %vm521_vm1, %v517_v36 }
 0x23b   : > { %743 = shalt.err (!%p740_p4)
}
 0x23c   : > { %624 = dma.vmem_to_hbm [thread:$0]  (%p861_p11), %s538_s24, 32, %s540_s25, %s525_s17  }
 0x23d PF: > { %s551_s16 = sand.u32 1, %s770_s6   ;;  %p1075_p7 = scmp.ge.s32.totalorder %s782_s9, 2 }
 0x23e   : > { %s552_s3 = scalar_lea.sflag [#allocation4], %s551_s16 }
 0x23f   : > { %p631_p5 = pnand %p1075_p7, %p865_p12 }
 0x241   : > { %p632_p8 = pneg %p631_p5 }
 0x243   : > { %765 = dma.done.wait (%p632_p8), %s552_s3, 32  }
 0x244   : > { %767 = vsyncadd (%p632_p8), %s552_s3, 4294967264  ;;  %p14_p10 = scmp.ge.s32.totalorder %s836_s12, 4   ;;  %s1076_s6 = smov %s774_s7 }
 0x245   : > { %s1077_s7 = smov %s778_s8  ;;  %s1078_s8 = smov %s848_s15 }
 0x246   : > { %s1079_s9 = smov %s836_s12  ;;  %16 = sbr.rel (!%p14_p10) target bundleno = 5 (0x5), region = 76 }
 0x24b   :  { %558 = vsyncpa [#allocation3], 1 }
 0x24c   :  { %560 = vsyncpa [#allocation3 + $0x1], 1 }
 0x24d   :  { %561 = vsyncpa [#allocation4], 1 }
 0x24e   :  { %563 = vsyncpa [#allocation4 + $0x1], 1 }

// kernel: tpu_custom_call.1
= control target key start
LH: loop header
LB: loop body
LE: loop exit
PB: predicated region body
PF: predicated region fallthrough
CT: control target
= control target key end

     0   :  { %6 = vsyncpa [#allocation3], 0  ;;  %s463_s0 = inlined_call_operand.hbm [shape: f32[2,8,32], index: 0, kind: input, shape index: {}]   ;;  %s464_s1 = inlined_call_operand.vmem [shape: f32[2,32,8], index: 1, kind: output, shape index: {}]  }
   0x1   :  { %8 = vsyncpa [#allocation3 + $0x1], 0  ;;  %s369_s6 = smov 0   ;;  %s371_s7 = smov 0  }
   0x2   :  { %s373_s8 = smov 0   ;;  %s375_s9 = smov 0  }
   0x3 LB: > { %s388_s10 = sadd.s32 4294967295, %s357_s9   ;;  %s391_s11 = sadd.s32 1, %s357_s9   ;;  %s357_s9 = sphi %s375_s9, %s471_s9   ;;  %s353_s8 = sphi %s373_s8, %s470_s8   ;;  %s349_s7 = sphi %s371_s7, %s469_s7   ;;  %s345_s6 = sphi %s369_s6, %s468_s6  }
   0x4   : > { %s18_s12 = ssub.s32 %s357_s9, %s391_s11  ;;  %s21_s13 = sadd.s32 1, %s353_s8 }
   0x5   : > { %p19_p0 = scmp.eq.s32.totalorder %s18_s12, 0  ;;  %p28_p1 = scmp.ne.s32.totalorder %s353_s8, %s349_s7 }
   0x6   : > { %p29_p2 = scmp.eq.s32.totalorder %s357_s9, 0  ;;  %p34_p3 = scmp.ne.s32.totalorder %s349_s7, %s345_s6 }
   0x7   : > { %s401_s14 = scalar_select %p19_p0, %s353_s8, %s21_s13  }
   0x8   : > { %p403_p4 = por %p29_p2, %p28_p1  ;;  %p35_p5 = scmp.eq.s32.totalorder %s388_s10, 0 }
   0x9   : > { %p259_p6 = scmp.lt.s32.totalorder %s357_s9, 2  ;;  %s84_s17 = sand.u32 1, %s353_s8  }
   0xa   : > { %p409_p7 = por %p35_p5, %p34_p3  ;;  %s244_s18 = sshll.u32 %s84_s17, 3 }
   0xb   : > { %s245_s19 = sshll.u32 %s357_s9, 3  ;;  %s88_s23 = scalar_lea.vmem [#allocation2], %s244_s18 }
   0xc   : > { %s92_s22 = scalar_lea.hbm %s463_s0, %s245_s19  ;;  %s96_s24 = sshll.u32 %s88_s23, 4  ;;  %s97_s24 = int_to_ptr.vmem [resolvable:$true] %s96_s24 }
   0xd   : > { %s94_s25 = sshll.u32 %s92_s22, 4  ;;  %p420_p8 = pnand %p259_p6, %p403_p4  ;;  %s95_s25 = int_to_ptr.hbm [resolvable:$true] %s94_s25 }
   0xe   : > { %p246_p9 = scmp.ge.s32.totalorder %s357_s9, 1  ;;  %p101_p10 = scmp.lt.s32.totalorder %s357_s9, 3 }
   0xf   : > { %s85_s27 = scalar_lea.sflag [#allocation3], %s84_s17  ;;  %s293_s28 = sshra.s32 %s95_s25, 4  ;;  %s294_s28 = int_to_ptr.hbm [resolvable:$true] %s293_s28 }
  0x10   : > { %s295_s29 = scalar_lea.hbm %s294_s28, 8  ;;  %p297_p12 = pneg %p420_p8 }
  0x11   : > { %p296_p11 = scmp.ne.s32.totalorder %s294_s28, %s295_s29  ;;  %s300_s3 = scalar_lea.hbm %s463_s0, 16 }
  0x12   : > { %p301_p1 = scmp.lt.s32.totalorder %s294_s28, %s463_s0  ;;  %p302_p2 = scmp.lt.s32.totalorder %s300_s3, %s295_s29 }
  0x13   : > { %p298_p13 = pnand %p297_p12, %p296_p11 }
  0x14   : > { %p303_p3 = por %p302_p2, %p301_p1 }
  0x15   : > { %p299_p0 = pneg %p298_p13 }
  0x17   : > { %p304_p4 = pnand %p303_p3, %p299_p0 }
  0x19   : > { %307 = shalt.err (!%p304_p4)
}
  0x1a   : > { %258 = dma.hbm_to_vmem [thread:$0]  (!%p420_p8), %s95_s25, 128, %s97_s24, %s85_s27  }
  0x1b   : > { %p102_p5 = pnand %p246_p9, %p101_p10 }
  0x1c   : > { %s107_s6 = sand.u32 (!%p102_p5), 1, %s349_s7  }
  0x1d   : > { %105 = sbr.rel (%p102_p5) target bundleno = 226 (0xe2), region = 24  ;;  %s247_s12 = sshll.u32 (!%p102_p5), %s107_s6, 3 }
  0x1e   : > { %s108_s13 = scalar_lea.sflag (!%p102_p5), [#allocation3], %s107_s6  ;;  %s111_s15 = scalar_lea.vmem (!%p102_p5), [#allocation2], %s247_s12 }
  0x22   : > { %340 = dma.done.wait (%p409_p7), %s108_s13, 128  }
  0x23   : > { %342 = vsyncadd (%p409_p7), %s108_s13, 4294967168  ;;  %v136_v0 = vld [vmem:[%s111_s15] sm:$0xff]  ;;  %p131_p6 = scmp.lt.s32.totalorder %s388_s10, 1  ;;  %vm169_vm0 = vcmask 64512  }
  0x24   : > { %137 = vxpose.xlu0.b32.start.end [1/1] (short) (narrow) %v136_v0, 32 }
  0x25   : > { %s473_s10 = smov (!%p131_p6, %s388_s10), 1 }
  0x26   : > { %s252_s9 = sshll.u32 %s473_s10, 5 }
  0x27   : > { %s135_s19 = scalar_lea.vmem %s464_s1, %s252_s9 }
  0xc8   : > { %v153_v1 = vpop.trf.xlu0 }
  0xc9   : > { %170 = vst.msk [vmem:[%s135_s19] sm:$0xff] %vm169_vm0, %v153_v1 }
  0xd0   : > { %v154_v2 = vpop.trf.xlu0 }
  0xd1   : > { %171 = vst.msk [vmem:[%s135_s19 + $0x8] sm:$0xff] %vm169_vm0, %v154_v2 }
  0xd8   : > { %v155_v3 = vpop.trf.xlu0 }
  0xd9   : > { %172 = vst.msk [vmem:[%s135_s19 + $0x10] sm:$0xff] %vm169_vm0, %v155_v3 }
  0xe0   : > { %v156_v4 = vpop.trf.xlu0 }
  0xe1   : > { %173 = vst.msk [vmem:[%s135_s19 + $0x18] sm:$0xff] %vm169_vm0, %v156_v4 }
  0xe2 PF: > { %p11_p7 = scmp.ge.s32.totalorder %s391_s11, 4   ;;  %s468_s6 = smov %s349_s7 }
  0xe3   : > { %s469_s7 = smov %s353_s8  ;;  %s470_s8 = smov %s401_s14 }
  0xe4   : > { %s471_s9 = smov %s391_s11  ;;  %13 = sbr.rel (!%p11_p7) target bundleno = 3 (0x3), region = 64 }
  0xe9   :  { %195 = vsyncpa [#allocation3], 1 }
  0xea   :  { %197 = vsyncpa [#allocation3 + $0x1], 1 }

</bundles_post_ra>
